<compile_context>
chip_gen: v6e
topology: v6e:2x2x1
jax: 0.10.0
libtpu: 0.0.40
codegen_flags: <defaults>
</compile_context>

<pallas_src>
import jax
import jax.numpy as jnp
from jax.experimental import pallas as pl
from jax.experimental.pallas import tpu as pltpu

LANE = 128


def _round_up(v, m):
    return ((v + m - 1) // m) * m


# ----------------------------- Pallas kernel ------------------------------

def _make_fused_kernel(num_enc, num_dec):
    """Fused forward: encoder GCN layers then decoder Linear layers.

    Refs: a_ref bf16 [Np,Np], x_ref bf16 [Np,Fp], w_ref bf16 [n_w,Fp,Fp] (W^T),
          b_ref f32 [n_w,1,Fp], o_ref f32 [Np,Fp].
    """

    def kernel(a_ref, x_ref, w_ref, b_ref, o_ref):
        a = a_ref[...]            # bf16 [Np, Np], resident in VMEM
        z = x_ref[...]            # bf16 [Np, Fp]  (no f32 round-trip)

        li = 0
        # --- encoder: GCNConv (A_hat @ (X @ W^T) + b) + ReLU per layer ---
        for _ in range(num_enc):
            w = w_ref[li]                          # bf16 [Fp, Fp]
            b = b_ref[li]                          # f32  [1, Fp]
            xw = jnp.dot(z, w, preferred_element_type=jnp.float32)
            agg = jnp.dot(a, xw.astype(jnp.bfloat16),
                          preferred_element_type=jnp.float32)
            z = jnp.maximum(agg + b, 0.0).astype(jnp.bfloat16)
            li += 1

        # --- decoder: Linear (+ ReLU between layers, none after the last) ---
        for d in range(num_dec):
            w = w_ref[li]
            b = b_ref[li]
            y = jnp.dot(z, w, preferred_element_type=jnp.float32) + b
            if d < num_dec - 1:
                z = jnp.maximum(y, 0.0).astype(jnp.bfloat16)
            else:
                o_ref[...] = y                     # lane-dense f32 store
            li += 1

    return kernel


def _fused_forward(a_pad, x_pad, w_packed, b_packed, num_enc, num_dec):
    n_pad, f_pad = x_pad.shape

    # Whole-array, no-pipelining VMEM blocks (grid-less single-shot call).
    vmem_spec = pl.BlockSpec(memory_space=pltpu.MemorySpace.VMEM)

    # Consistent (padded-shape) advisory cost estimate.
    flops = 0
    for _ in range(num_enc):
        flops += 2 * n_pad * f_pad * f_pad + 2 * n_pad * n_pad * f_pad
    for _ in range(num_dec):
        flops += 2 * n_pad * f_pad * f_pad
    out_bytes = n_pad * f_pad * 4
    bytes_accessed = (a_pad.size * a_pad.dtype.itemsize
                      + x_pad.size * x_pad.dtype.itemsize
                      + w_packed.size * w_packed.dtype.itemsize
                      + b_packed.size * b_packed.dtype.itemsize
                      + out_bytes)

    # VMEM limit: one resident copy of each operand + f32 output + f32 temps.
    vmem_limit = bytes_accessed + 4 * n_pad * f_pad * 4 + (4 << 20)
    vmem_limit = max(vmem_limit, 16 << 20)
    vmem_limit = min(vmem_limit, 64 << 20)   # v7x has the lowest physical ceiling

    return pl.pallas_call(
        _make_fused_kernel(num_enc, num_dec),
        out_shape=jax.ShapeDtypeStruct((n_pad, f_pad), jnp.float32),
        in_specs=[vmem_spec, vmem_spec, vmem_spec, vmem_spec],
        out_specs=vmem_spec,
        compiler_params=pltpu.CompilerParams(vmem_limit_bytes=int(vmem_limit)),
        cost_estimate=pl.CostEstimate(flops=int(flops), transcendentals=0,
                                      bytes_accessed=int(bytes_accessed)),
    )(a_pad, x_pad, w_packed, b_packed)


# ------------------------------ JAX glue ----------------------------------

def gcn_norm_dense(edge_index, edge_weight, num_nodes):
    """Dense normalized adjacency (with self-loops), PyG GCNConv semantics. f32."""
    row, col = edge_index[0], edge_index[1]          # edges: row (src) -> col (dst)
    if edge_weight is None:
        edge_weight = jnp.ones(row.shape[0], dtype=jnp.float32)
    loop = jnp.arange(num_nodes, dtype=row.dtype)
    row = jnp.concatenate([row, loop])
    col = jnp.concatenate([col, loop])
    ew = jnp.concatenate([edge_weight.astype(jnp.float32),
                          jnp.ones(num_nodes, dtype=jnp.float32)])
    deg = jnp.zeros(num_nodes, dtype=jnp.float32).at[col].add(ew)
    dinv = jnp.where(deg > 0, jax.lax.rsqrt(deg), 0.0)
    norm = dinv[row] * ew * dinv[col]
    a_hat = jnp.zeros((num_nodes, num_nodes), dtype=jnp.float32)
    a_hat = a_hat.at[col, row].add(norm)             # out[dst] += norm * x[src]
    return a_hat


def init_params(key, layer_dims):
    """Deterministic parameter init. Weights stored PyTorch-style as [out, in]."""
    params = {"enc": [], "dec": []}
    for i in range(len(layer_dims) - 1):
        key, k1 = jax.random.split(key)
        fin, fout = layer_dims[i], layer_dims[i + 1]
        w = jax.random.normal(k1, (fout, fin), jnp.float32) * (1.0 / jnp.sqrt(fin))
        b = jnp.zeros((fout,), jnp.float32)
        params["enc"].append((w, b))
    rdims = layer_dims[::-1]
    for i in range(len(rdims) - 1):
        key, k1, k2 = jax.random.split(key, 3)
        fin, fout = rdims[i], rdims[i + 1]
        w = jax.random.normal(k1, (fout, fin), jnp.float32) * (1.0 / jnp.sqrt(fin))
        b = jax.random.normal(k2, (fout,), jnp.float32) * 0.01
        params["dec"].append((w, b))
    return params


def _pad2d(x, rows, cols):
    return jnp.pad(x, ((0, rows - x.shape[0]), (0, cols - x.shape[1])))


def gcn2mlp_forward(params, x, edge_index, edge_weight=None):
    n, f_in = x.shape
    num_enc = len(params["enc"])
    num_dec = len(params["dec"])
    f_out_final = params["dec"][-1][0].shape[0]

    # lane-dense padded sizes (single Fp so weights can be packed into one array)
    all_dims = ([f_in] + [w.shape[0] for (w, _) in params["enc"]]
                + [w.shape[0] for (w, _) in params["dec"]])
    f_pad = _round_up(max(all_dims), LANE)
    n_pad = _round_up(max(n, 8), LANE)

    # normalized adjacency in f32, cast to bf16 for the MXU
    a_hat = gcn_norm_dense(edge_index, edge_weight, n)
    a_pad = _pad2d(a_hat, n_pad, n_pad).astype(jnp.bfloat16)
    x_pad = _pad2d(x.astype(jnp.float32), n_pad, f_pad).astype(jnp.bfloat16)

    # pack all layer weights (as W^T, zero-padded) and biases into two arrays
    wts, bs = [], []
    for (w, b) in params["enc"] + params["dec"]:
        wts.append(_pad2d(w.T.astype(jnp.float32), f_pad, f_pad).astype(jnp.bfloat16))
        bs.append(jnp.pad(b.astype(jnp.float32),
                          (0, f_pad - b.shape[0])).reshape(1, 1, f_pad))
    w_packed = jnp.stack(wts, axis=0)        # bf16 [n_w, Fp, Fp]
    b_packed = jnp.concatenate(bs, axis=0)   # f32  [n_w, 1, Fp]

    out_pad = _fused_forward(a_pad, x_pad, w_packed, b_packed, num_enc, num_dec)
    # Padded node rows accumulate decoder bias (f(b), not 0): always slice here.
    return out_pad[:n, :f_out_final]


# ------------------------------ main --------------------------------------

if __name__ == "__main__":
    key = jax.random.PRNGKey(0)
    N = 16                       # number of graph nodes
    layer_dims = [8, 32, 16]     # encoder: 8->32->16 ; decoder: 16->32->8

    key, kx = jax.random.split(key)
    x = jax.random.normal(kx, (N, layer_dims[0]), jnp.float32)

    # simple bidirectional ring graph
    src = jnp.arange(N, dtype=jnp.int32)
    dst = (src + 1) % N
    edge_index = jnp.stack([jnp.concatenate([src, dst]),
                            jnp.concatenate([dst, src])], axis=0)  # [2, 2N]
    edge_weight = jnp.ones((2 * N,), jnp.float32)

    params = init_params(key, layer_dims)

    out = gcn2mlp_forward(params, x, edge_index, edge_weight)
    out = jax.block_until_ready(out)
    assert out.shape == (N, layer_dims[0])
    print("KERNEL_OK")
</pallas_src>

<mosaic_0001>
module attributes {stable_mosaic.version = 11 : i64} {
  func.func @kernel(%arg0: memref<128x128xbf16, #tpu.memory_space<vmem>>, %arg1: memref<128x128xbf16, #tpu.memory_space<vmem>>, %arg2: memref<4x128x128xbf16, #tpu.memory_space<vmem>>, %arg3: memref<4x1x128xf32, #tpu.memory_space<vmem>>, %arg4: memref<128x128xf32, #tpu.memory_space<vmem>>) attributes {dimension_semantics = [], scalar_prefetch = 0 : i64, scratch_operands = 0 : i64, tpu.core_type = #tpu.core_type<tc>} {
    %c0 = arith.constant 0 : index
    %c0_0 = arith.constant 0 : index
    %0 = vector.load %arg0[%c0, %c0_0] : memref<128x128xbf16, #tpu.memory_space<vmem>>, vector<128x128xbf16>
    %c0_1 = arith.constant 0 : index
    %c0_2 = arith.constant 0 : index
    %1 = vector.load %arg1[%c0_1, %c0_2] : memref<128x128xbf16, #tpu.memory_space<vmem>>, vector<128x128xbf16>
    %c0_3 = arith.constant 0 : index
    %c0_4 = arith.constant 0 : index
    %c0_5 = arith.constant 0 : index
    %2 = vector.load %arg2[%c0_3, %c0_4, %c0_5] : memref<4x128x128xbf16, #tpu.memory_space<vmem>>, vector<1x128x128xbf16>
    %3 = vector.shape_cast %2 : vector<1x128x128xbf16> to vector<128x128xbf16>
    %c0_6 = arith.constant 0 : index
    %c0_7 = arith.constant 0 : index
    %c0_8 = arith.constant 0 : index
    %4 = vector.load %arg3[%c0_6, %c0_7, %c0_8] : memref<4x1x128xf32, #tpu.memory_space<vmem>>, vector<1x1x128xf32>
    %5 = vector.shape_cast %4 : vector<1x1x128xf32> to vector<1x128xf32>
    %cst = arith.constant dense<0.000000e+00> : vector<128x128xf32>
    %6 = tpu.matmul %1, %3, %cst {dimension_numbers = #tpu.dot_dimension_numbers<[1], [0], [0], [1], [0, 0, 1, 1], [], []>} : vector<128x128xbf16>, vector<128x128xbf16>, vector<128x128xf32> -> vector<128x128xf32>
    %7 = arith.truncf %6 : vector<128x128xf32> to vector<128x128xbf16>
    %cst_9 = arith.constant dense<0.000000e+00> : vector<128x128xf32>
    %8 = tpu.matmul %0, %7, %cst_9 {dimension_numbers = #tpu.dot_dimension_numbers<[1], [0], [0], [1], [0, 0, 1, 1], [], []>} : vector<128x128xbf16>, vector<128x128xbf16>, vector<128x128xf32> -> vector<128x128xf32>
    %9 = vector.broadcast %5 : vector<1x128xf32> to vector<128x128xf32>
    %10 = arith.addf %8, %9 : vector<128x128xf32>
    %cst_10 = arith.constant 0.000000e+00 : f32
    %11 = vector.broadcast %cst_10 : f32 to vector<128x128xf32>
    %12 = arith.maximumf %10, %11 : vector<128x128xf32>
    %13 = arith.truncf %12 : vector<128x128xf32> to vector<128x128xbf16>
    %c1 = arith.constant 1 : index
    %c0_11 = arith.constant 0 : index
    %c0_12 = arith.constant 0 : index
    %14 = vector.load %arg2[%c1, %c0_11, %c0_12] : memref<4x128x128xbf16, #tpu.memory_space<vmem>>, vector<1x128x128xbf16>
    %15 = vector.shape_cast %14 : vector<1x128x128xbf16> to vector<128x128xbf16>
    %c1_13 = arith.constant 1 : index
    %c0_14 = arith.constant 0 : index
    %c0_15 = arith.constant 0 : index
    %16 = vector.load %arg3[%c1_13, %c0_14, %c0_15] : memref<4x1x128xf32, #tpu.memory_space<vmem>>, vector<1x1x128xf32>
    %17 = vector.shape_cast %16 : vector<1x1x128xf32> to vector<1x128xf32>
    %cst_16 = arith.constant dense<0.000000e+00> : vector<128x128xf32>
    %18 = tpu.matmul %13, %15, %cst_16 {dimension_numbers = #tpu.dot_dimension_numbers<[1], [0], [0], [1], [0, 0, 1, 1], [], []>} : vector<128x128xbf16>, vector<128x128xbf16>, vector<128x128xf32> -> vector<128x128xf32>
    %19 = arith.truncf %18 : vector<128x128xf32> to vector<128x128xbf16>
    %cst_17 = arith.constant dense<0.000000e+00> : vector<128x128xf32>
    %20 = tpu.matmul %0, %19, %cst_17 {dimension_numbers = #tpu.dot_dimension_numbers<[1], [0], [0], [1], [0, 0, 1, 1], [], []>} : vector<128x128xbf16>, vector<128x128xbf16>, vector<128x128xf32> -> vector<128x128xf32>
    %21 = vector.broadcast %17 : vector<1x128xf32> to vector<128x128xf32>
    %22 = arith.addf %20, %21 : vector<128x128xf32>
    %cst_18 = arith.constant 0.000000e+00 : f32
    %23 = vector.broadcast %cst_18 : f32 to vector<128x128xf32>
    %24 = arith.maximumf %22, %23 : vector<128x128xf32>
    %25 = arith.truncf %24 : vector<128x128xf32> to vector<128x128xbf16>
    %c2 = arith.constant 2 : index
    %c0_19 = arith.constant 0 : index
    %c0_20 = arith.constant 0 : index
    %26 = vector.load %arg2[%c2, %c0_19, %c0_20] : memref<4x128x128xbf16, #tpu.memory_space<vmem>>, vector<1x128x128xbf16>
    %27 = vector.shape_cast %26 : vector<1x128x128xbf16> to vector<128x128xbf16>
    %c2_21 = arith.constant 2 : index
    %c0_22 = arith.constant 0 : index
    %c0_23 = arith.constant 0 : index
    %28 = vector.load %arg3[%c2_21, %c0_22, %c0_23] : memref<4x1x128xf32, #tpu.memory_space<vmem>>, vector<1x1x128xf32>
    %29 = vector.shape_cast %28 : vector<1x1x128xf32> to vector<1x128xf32>
    %cst_24 = arith.constant dense<0.000000e+00> : vector<128x128xf32>
    %30 = tpu.matmul %25, %27, %cst_24 {dimension_numbers = #tpu.dot_dimension_numbers<[1], [0], [0], [1], [0, 0, 1, 1], [], []>} : vector<128x128xbf16>, vector<128x128xbf16>, vector<128x128xf32> -> vector<128x128xf32>
    %31 = vector.broadcast %29 : vector<1x128xf32> to vector<128x128xf32>
    %32 = arith.addf %30, %31 : vector<128x128xf32>
    %cst_25 = arith.constant 0.000000e+00 : f32
    %33 = vector.broadcast %cst_25 : f32 to vector<128x128xf32>
    %34 = arith.maximumf %32, %33 : vector<128x128xf32>
    %35 = arith.truncf %34 : vector<128x128xf32> to vector<128x128xbf16>
    %c3 = arith.constant 3 : index
    %c0_26 = arith.constant 0 : index
    %c0_27 = arith.constant 0 : index
    %36 = vector.load %arg2[%c3, %c0_26, %c0_27] : memref<4x128x128xbf16, #tpu.memory_space<vmem>>, vector<1x128x128xbf16>
    %37 = vector.shape_cast %36 : vector<1x128x128xbf16> to vector<128x128xbf16>
    %c3_28 = arith.constant 3 : index
    %c0_29 = arith.constant 0 : index
    %c0_30 = arith.constant 0 : index
    %38 = vector.load %arg3[%c3_28, %c0_29, %c0_30] : memref<4x1x128xf32, #tpu.memory_space<vmem>>, vector<1x1x128xf32>
    %39 = vector.shape_cast %38 : vector<1x1x128xf32> to vector<1x128xf32>
    %cst_31 = arith.constant dense<0.000000e+00> : vector<128x128xf32>
    %40 = tpu.matmul %35, %37, %cst_31 {dimension_numbers = #tpu.dot_dimension_numbers<[1], [0], [0], [1], [0, 0, 1, 1], [], []>} : vector<128x128xbf16>, vector<128x128xbf16>, vector<128x128xf32> -> vector<128x128xf32>
    %41 = vector.broadcast %39 : vector<1x128xf32> to vector<128x128xf32>
    %42 = arith.addf %40, %41 : vector<128x128xf32>
    %c0_32 = arith.constant 0 : index
    %c0_33 = arith.constant 0 : index
    %43 = vector.load %arg4[%c0_32, %c0_33] : memref<128x128xf32, #tpu.memory_space<vmem>>, vector<128x128xf32>
    tpu.vector_store %arg4[%c0_32, %c0_33], %42 {strides = array<i32>} : memref<128x128xf32, #tpu.memory_space<vmem>>, vector<128x128xf32>,
    return
  }
}

</mosaic_0001>

<bundles_post_ra>
// kernel: tpu_custom_call.1
= control target key start
LH: loop header
LB: loop body
LE: loop exit
PB: predicated region body
PF: predicated region fallthrough
CT: control target
= control target key end

     0   :  { %9 = vsyncpa [#allocation3], 0  ;;  %s1756_s0 = inlined_call_operand.hbm [shape: bf16[128,128], index: 0, kind: input, shape index: {}]   ;;  %s1757_s1 = inlined_call_operand.hbm [shape: bf16[128,128], index: 1, kind: input, shape index: {}]   ;;  %s1758_s2 = inlined_call_operand.hbm [shape: bf16[4,128,128], index: 2, kind: input, shape index: {}]   ;;  %s1759_s3 = inlined_call_operand.vmem [shape: f32[4,1,128], index: 3, kind: input, shape index: {}]   ;;  %s1760_s4 = inlined_call_operand.hbm [shape: f32[128,128], index: 4, kind: output, shape index: {}]  }
   0x1   :  { %10 = vsyncpa [#allocation6], 0 }
   0x2   :  { %11 = vsyncpa [#allocation4], 0  ;;  %s1667_s15 = smov [#allocation5]   ;;  %s1668_s17 = smov [#allocation2]  }
   0x3   :  { %s29_s16 = sshll.u32 %s1667_s15, 4  ;;  %s17_s18 = sshll.u32 %s1668_s17, 4  ;;  %s30_s16 = int_to_ptr.vmem [resolvable:$true] %s29_s16  ;;  %s18_s18 = int_to_ptr.vmem [resolvable:$true] %s17_s18 }
   0x4   :  { %s1589_s19 = scalar_lea.vmem %s30_s16, 1024  ;;  %p1594_p1 = scmp.lt.s32.totalorder %s30_s16, %s30_s16 }
   0x5   :  { %p1590_p0 = scmp.ne.s32.totalorder %s30_s16, %s1589_s19  ;;  %p1595_p2 = scmp.lt.s32.totalorder %s1589_s19, %s1589_s19 }
   0x7   :  { %p1596_p3 = por %p1595_p2, %p1594_p1 }
   0x9   :  { %p1597_p4 = pnand %p1596_p3, %p1590_p0 }
   0xb   :  { %1600 = shalt.err (!%p1597_p4)
}
   0xc   :  { %s1669_s20 = smov 64   ;;  %s1670_s21 = smov 4  }
   0xd   :  { %35 = dma.hbm_to_vmem [thread:$0]  %s1757_s1, 1024, %s30_s16, [#allocation6], %s1669_s20, %s1669_s20, %s1670_s21  }
   0xe   :  { %s1609_s24 = scalar_lea.vmem %s18_s18, 1024  ;;  %p1614_p6 = scmp.lt.s32.totalorder %s18_s18, %s18_s18 }
   0xf   :  { %p1610_p5 = scmp.ne.s32.totalorder %s18_s18, %s1609_s24  ;;  %p1615_p7 = scmp.lt.s32.totalorder %s1609_s24, %s1609_s24 }
  0x11   :  { %p1616_p8 = por %p1615_p7, %p1614_p6 }
  0x13   :  { %p1617_p9 = pnand %p1616_p8, %p1610_p5 }
  0x15   :  { %1620 = shalt.err (!%p1617_p9)
}
  0x16   :  { %23 = dma.hbm_to_vmem [thread:$0]  %s1756_s0, 1024, %s18_s18, [#allocation3], %s1669_s20, %s1669_s20, %s1670_s21  }
  0x17   :  { %s1671_s27 = smov [#allocation7]  }
  0x18   :  { %s41_s28 = sshll.u32 %s1671_s27, 4  ;;  %s42_s28 = int_to_ptr.vmem [resolvable:$true] %s41_s28 }
  0x19   :  { %s1629_s29 = scalar_lea.vmem %s42_s28, 4096  ;;  %p1634_p11 = scmp.lt.s32.totalorder %s42_s28, %s42_s28 }
  0x1a   :  { %p1630_p10 = scmp.ne.s32.totalorder %s42_s28, %s1629_s29  ;;  %p1635_p12 = scmp.lt.s32.totalorder %s1629_s29, %s1629_s29 }
  0x1c   :  { %p1636_p13 = por %p1635_p12, %p1634_p11 }
  0x1e   :  { %p1637_p0 = pnand %p1636_p13, %p1630_p10 }
  0x20   :  { %1640 = shalt.err (!%p1637_p0)
}
  0x21   :  { %47 = dma.hbm_to_vmem [thread:$0]  %s1758_s2, 4096, %s42_s28, [#allocation6], %s1669_s20, %s1669_s20, %s1670_s21  }
  0x22   :  { %1661 = dma.done.wait [#allocation3], 1024  }
  0x23   :  { %1662 = vsyncadd [#allocation3], 4294966272 }
  0x24   :  { %1663 = dma.done.wait [#allocation6], 5120  }
  0x25   :  { %1664 = vsyncadd [#allocation6], 4294962176  ;;  %v1533_v0 = vld [vmem:[#allocation7 + $0x38] sm:$0xff]   ;;  %v1534_v1 = vld [vmem:[#allocation7 + $0x30] sm:$0xff]  }
  0x26   :  { %1333 = vmatprep.subr.bf16.mxu0 %v1533_v0  ;;  %v1535_v2 = vld [vmem:[#allocation7 + $0x28] sm:$0xff]   ;;  %v1536_v3 = vld [vmem:[#allocation7 + $0x20] sm:$0xff]   ;;  %v1537_v5 = vld [vmem:[#allocation7 + $0x18] sm:$0xff]  }
  0x27   :  { %1334 = vmatpush3.bf16.msra.mxu0 %v1533_v0  ;;  %v1541_v4 = vld [vmem:[#allocation5] sm:$0xff]   ;;  %v1538_v6 = vld [vmem:[#allocation7 + $0x10] sm:$0xff]   ;;  %v1539_v7 = vld [vmem:[#allocation7 + $0x8] sm:$0xff]  }
  0x28   :  { %1335 = vmatprep.subr.bf16.mxu0 %v1534_v1  ;;  %1349 = vmatprep.mubr.bf16.mxu0 %v1541_v4  ;;  %v1540_v8 = vld [vmem:[#allocation7] sm:$0xff]   ;;  %v1542_v9 = vld [vmem:[#allocation5 + $0x8] sm:$0xff]   ;;  %v1543_v10 = vld [vmem:[#allocation5 + $0x10] sm:$0xff]  }
  0x29   :  { %v1544_v11 = vld [vmem:[#allocation5 + $0x18] sm:$0xff]   ;;  %v1545_v12 = vld [vmem:[#allocation5 + $0x20] sm:$0xff]   ;;  %v1546_v13 = vld [vmem:[#allocation5 + $0x28] sm:$0xff]  }
  0x2a   :  { %v1547_v14 = vld [vmem:[#allocation5 + $0x30] sm:$0xff]   ;;  %v1548_v15 = vld [vmem:[#allocation5 + $0x38] sm:$0xff]   ;;  %v1709_v16 = vld [vmem:[#allocation2] sm:$0xff]  }
  0x2b   :  { %1336 = vmatpush3.bf16.msra.mxu0 %v1534_v1  ;;  %1381 = vmatprep.mubr.bf16.mxu1 %v1709_v16  ;;  %v1557_v17 = vld [vmem:[#allocation7 + $0x78] sm:$0xff]   ;;  %v1558_v18 = vld [vmem:[#allocation7 + $0x70] sm:$0xff]   ;;  %v1559_v19 = vld [vmem:[#allocation7 + $0x68] sm:$0xff]  }
  0x2c   :  { %1337 = vmatprep.subr.bf16.mxu0 %v1535_v2  ;;  %v1560_v20 = vld [vmem:[#allocation7 + $0x60] sm:$0xff]   ;;  %v1561_v21 = vld [vmem:[#allocation7 + $0x58] sm:$0xff]   ;;  %v1712_v46 = vld [vmem:[#allocation2 + $0x8] sm:$0xff]  }
  0x2d   :  { %v1714_v47 = vld [vmem:[#allocation2 + $0x10] sm:$0xff]   ;;  %v1718_v48 = vld [vmem:[#allocation2 + $0x18] sm:$0xff]   ;;  %v1720_v49 = vld [vmem:[#allocation2 + $0x20] sm:$0xff]  }
  0x2e   :  { %v1724_v50 = vld [vmem:[#allocation2 + $0x28] sm:$0xff]   ;;  %v1726_v51 = vld [vmem:[#allocation2 + $0x30] sm:$0xff]   ;;  %v1730_v52 = vld [vmem:[#allocation2 + $0x38] sm:$0xff]  }
  0x2f   :  { %1338 = vmatpush3.bf16.msra.mxu0 %v1535_v2  ;;  %v1562_v53 = vld [vmem:[#allocation7 + $0x50] sm:$0xff]   ;;  %v1563_v54 = vld [vmem:[#allocation7 + $0x48] sm:$0xff]   ;;  %v1564_v55 = vld [vmem:[#allocation7 + $0x40] sm:$0xff]  }
  0x30   :  { %1339 = vmatprep.subr.bf16.mxu0 %v1536_v3  ;;  %v1198_v58 = vld [vmem:[%s1759_s3] ss:$0 sm:$0xff] }
  0x33   :  { %1340 = vmatpush3.bf16.msra.mxu0 %v1536_v3 }
  0x34   :  { %1341 = vmatprep.subr.bf16.mxu0 %v1537_v5 }
  0x37   :  { %1342 = vmatpush3.bf16.msra.mxu0 %v1537_v5 }
  0x38   :  { %1343 = vmatprep.subr.bf16.mxu0 %v1538_v6 }
  0x3b   :  { %1344 = vmatpush3.bf16.msra.mxu0 %v1538_v6 }
  0x3c   :  { %1345 = vmatprep.subr.bf16.mxu0 %v1539_v7 }
  0x3f   :  { %1346 = vmatpush3.bf16.msra.mxu0 %v1539_v7 }
  0x40   :  { %1347 = vmatprep.subr.bf16.mxu0 %v1540_v8 }
  0x43   :  { %1348 = vmatpush3.bf16.msra.mxu0 %v1540_v8 }
  0x44   :  { %1397 = vmatprep.subr.bf16.mxu0 %v1557_v17 }
  0x46   :  { %1350 = vmatmul.mubr.bf16.vlgmr.msra.gmra.mxu0 %v1542_v9 }
  0x47   :  { %1353 = vmatprep.mubr.bf16.mxu0 %v1543_v10  ;;  %1398 = vmatpush3.bf16.msra.mxu0 %v1557_v17 }
  0x48   :  { %1399 = vmatprep.subr.bf16.mxu0 %v1558_v18 }
  0x4b   :  { %1400 = vmatpush3.bf16.msra.mxu0 %v1558_v18 }
  0x4c   :  { %1401 = vmatprep.subr.bf16.mxu0 %v1559_v19 }
  0x4e   :  { %1354 = vmatmul.mubr.bf16.gmra.mxu0 %v1544_v11 }
  0x4f   :  { %1357 = vmatprep.mubr.bf16.mxu0 %v1545_v12  ;;  %1402 = vmatpush3.bf16.msra.mxu0 %v1559_v19 }
  0x50   :  { %1403 = vmatprep.subr.bf16.mxu0 %v1560_v20 }
  0x53   :  { %1404 = vmatpush3.bf16.msra.mxu0 %v1560_v20 }
  0x54   :  { %1405 = vmatprep.subr.bf16.mxu0 %v1561_v21 }
  0x56   :  { %1358 = vmatmul.mubr.bf16.gmra.mxu0 %v1546_v13 }
  0x57   :  { %1361 = vmatprep.mubr.bf16.mxu0 %v1547_v14  ;;  %1406 = vmatpush3.bf16.msra.mxu0 %v1561_v21 }
  0x58   :  { %1407 = vmatprep.subr.bf16.mxu0 %v1562_v53 }
  0x5b   :  { %1408 = vmatpush3.bf16.msra.mxu0 %v1562_v53 }
  0x5c   :  { %1409 = vmatprep.subr.bf16.mxu0 %v1563_v54 }
  0x5e   :  { %1362 = vmatmul.mubr.bf16.gmra.mxu0 %v1548_v15 }
  0x5f   :  { %1410 = vmatpush3.bf16.msra.mxu0 %v1563_v54 }
  0x60   :  { %1411 = vmatprep.subr.bf16.mxu0 %v1564_v55 }
  0x63   :  { %1412 = vmatpush3.bf16.msra.mxu0 %v1564_v55 }
 0x106   :  { %v1351_v22 = vpop.f32.mrf.mxu0 }
 0x108   :  { %v239_v23 = vpop.f32.mrf.mxu0 }
 0x10a   :  { %v1352_v24 = vpop.f32.mrf.mxu0 }
 0x10b   :  { %v303_v44 = vpack.c.bf16 %v1352_v24, %v1351_v22 }
 0x10c   :  { %v242_v25 = vpop.f32.mrf.mxu0 }
 0x10d   :  { %v302_v45 = vpack.c.bf16 %v242_v25, %v239_v23 }
 0x10e   :  { %v1355_v26 = vpop.f32.mrf.mxu0 }
 0x110   :  { %v255_v27 = vpop.f32.mrf.mxu0 }
 0x112   :  { %v1356_v28 = vpop.f32.mrf.mxu0 }
 0x113   :  { %v305_v42 = vpack.c.bf16 %v1356_v28, %v1355_v26 }
 0x114   :  { %v258_v29 = vpop.f32.mrf.mxu0 }
 0x115   :  { %v304_v43 = vpack.c.bf16 %v258_v29, %v255_v27 }
 0x116   :  { %v1359_v30 = vpop.f32.mrf.mxu0 }
 0x118   :  { %v271_v31 = vpop.f32.mrf.mxu0 }
 0x11a   :  { %v1360_v32 = vpop.f32.mrf.mxu0 }
 0x11b   :  { %v307_v40 = vpack.c.bf16 %v1360_v32, %v1359_v30 }
 0x11c   :  { %v274_v33 = vpop.f32.mrf.mxu0 }
 0x11d   :  { %v306_v41 = vpack.c.bf16 %v274_v33, %v271_v31 }
 0x11e   :  { %v1363_v34 = vpop.f32.mrf.mxu0 }
 0x120   :  { %v287_v35 = vpop.f32.mrf.mxu0 }
 0x122   :  { %v1364_v36 = vpop.f32.mrf.mxu0 }
 0x123   :  { %v309_v37 = vpack.c.bf16 %v1364_v36, %v1363_v34 }
 0x124   :  { %v290_v38 = vpop.f32.mrf.mxu0 }
 0x125   :  { %v308_v39 = vpack.c.bf16 %v290_v38, %v287_v35  ;;  %1365 = vmatprep.subr.bf16.mxu1 %v309_v37 }
 0x126   :  { %1366 = vmatpush3.bf16.msra.mxu1 %v309_v37 }
 0x127   :  { %1367 = vmatprep.subr.bf16.mxu1 %v308_v39 }
 0x12a   :  { %1368 = vmatpush3.bf16.msra.mxu1 %v308_v39 }
 0x12b   :  { %1369 = vmatprep.subr.bf16.mxu1 %v307_v40 }
 0x12e   :  { %1370 = vmatpush3.bf16.msra.mxu1 %v307_v40 }
 0x12f   :  { %1371 = vmatprep.subr.bf16.mxu1 %v306_v41 }
 0x132   :  { %1372 = vmatpush3.bf16.msra.mxu1 %v306_v41 }
 0x133   :  { %1373 = vmatprep.subr.bf16.mxu1 %v305_v42 }
 0x136   :  { %1374 = vmatpush3.bf16.msra.mxu1 %v305_v42 }
 0x137   :  { %1375 = vmatprep.subr.bf16.mxu1 %v304_v43 }
 0x13a   :  { %1376 = vmatpush3.bf16.msra.mxu1 %v304_v43 }
 0x13b   :  { %1377 = vmatprep.subr.bf16.mxu1 %v303_v44 }
 0x13e   :  { %1378 = vmatpush3.bf16.msra.mxu1 %v303_v44 }
 0x13f   :  { %1379 = vmatprep.subr.bf16.mxu1 %v302_v45 }
 0x142   :  { %1380 = vmatpush3.bf16.msra.mxu1 %v302_v45 }
 0x145   :  { %1382 = vmatmul.mubr.bf16.vlgmr.msra.gmra.mxu1 %v1712_v46 }
 0x146   :  { %1385 = vmatprep.mubr.bf16.mxu1 %v1714_v47 }
 0x14d   :  { %1386 = vmatmul.mubr.bf16.gmra.mxu1 %v1718_v48 }
 0x14e   :  { %1389 = vmatprep.mubr.bf16.mxu1 %v1720_v49 }
 0x155   :  { %1390 = vmatmul.mubr.bf16.gmra.mxu1 %v1724_v50 }
 0x156   :  { %1393 = vmatprep.mubr.bf16.mxu1 %v1726_v51 }
 0x15d   :  { %1394 = vmatmul.mubr.bf16.gmra.mxu1 %v1730_v52 }
 0x15e   :  { %1445 = vmatprep.mubr.bf16.mxu1 %v1709_v16 }
 0x205   :  { %v1383_v56 = vpop.f32.mrf.mxu1 }
 0x206   :  { %v407_v62 = vadd.f32 %v1383_v56, %v1198_v58  ;;  %v1565_v56 = vld [vmem:[#allocation7 + $0xb8] sm:$0xff]  }
 0x207   :  { %v398_v57 = vpop.f32.mrf.mxu1  ;;  %1461 = vmatprep.subr.bf16.mxu0 %v1565_v56 }
 0x208   :  { %v399_v60 = vadd.f32 %v1198_v58, %v398_v57  ;;  %v463_v5 = vmax.f32 %v407_v62, 0.0  ;;  %v1566_v57 = vld [vmem:[#allocation7 + $0xb0] sm:$0xff]  }
 0x209   :  { %v1384_v59 = vpop.f32.mrf.mxu1 }
 0x20a   :  { %v410_v61 = vadd.f32 %v1384_v59, %v1198_v58  ;;  %v461_v3 = vmax.f32 %v399_v60, 0.0  ;;  %v1567_v59 = vld [vmem:[#allocation7 + $0xa8] sm:$0xff]   ;;  %v1568_v60 = vld [vmem:[#allocation7 + $0xa0] sm:$0xff]  }
 0x20b   :  { %v401_v63 = vpop.f32.mrf.mxu1 }
 0x20c   :  { %v402_v0 = vadd.f32 %v1198_v58, %v401_v63  ;;  %v464_v1 = vmax.f32 %v410_v61, 0.0 }
 0x20d   :  { %v1387_v2 = vpop.f32.mrf.mxu1 }
 0x20e   :  { %v462_v4 = vmax.f32 %v402_v0, 0.0  ;;  %v478_v8 = vpack.c.bf16 %v464_v1, %v463_v5  ;;  %v423_v12 = vadd.f32 %v1387_v2, %v1198_v58 }
 0x20f   :  { %v414_v6 = vpop.f32.mrf.mxu1 }
 0x210   :  { %v477_v7 = vpack.c.bf16 %v462_v4, %v461_v3  ;;  %v415_v10 = vadd.f32 %v1198_v58, %v414_v6  ;;  %v467_v19 = vmax.f32 %v423_v12, 0.0 }
 0x211   :  { %v1388_v9 = vpop.f32.mrf.mxu1 }
 0x212   :  { %v426_v11 = vadd.f32 %v1388_v9, %v1198_v58  ;;  %1413 = vmatprep.mubr.bf16.mxu0 %v477_v7  ;;  %v465_v17 = vmax.f32 %v415_v10, 0.0 }
 0x213   :  { %v417_v13 = vpop.f32.mrf.mxu1  ;;  %1414 = vmatmul.mubr.bf16.vlgmr.msra.gmra.mxu0 %v478_v8 }
 0x214   :  { %v418_v14 = vadd.f32 %v1198_v58, %v417_v13  ;;  %v468_v15 = vmax.f32 %v426_v11, 0.0  ;;  %1462 = vmatpush3.bf16.msra.mxu0 %v1565_v56 }
 0x215   :  { %v1391_v16 = vpop.f32.mrf.mxu1  ;;  %1463 = vmatprep.subr.bf16.mxu0 %v1566_v57 }
 0x216   :  { %v466_v18 = vmax.f32 %v418_v14, 0.0  ;;  %v480_v22 = vpack.c.bf16 %v468_v15, %v467_v19  ;;  %v439_v26 = vadd.f32 %v1391_v16, %v1198_v58 }
 0x217   :  { %v430_v20 = vpop.f32.mrf.mxu1 }
 0x218   :  { %v479_v21 = vpack.c.bf16 %v466_v18, %v465_v17  ;;  %v431_v24 = vadd.f32 %v1198_v58, %v430_v20  ;;  %v471_v33 = vmax.f32 %v439_v26, 0.0  ;;  %1464 = vmatpush3.bf16.msra.mxu0 %v1566_v57 }
 0x219   :  { %v1392_v23 = vpop.f32.mrf.mxu1  ;;  %1465 = vmatprep.subr.bf16.mxu0 %v1567_v59 }
 0x21a   :  { %v442_v25 = vadd.f32 %v1392_v23, %v1198_v58  ;;  %1417 = vmatprep.mubr.bf16.mxu0 %v479_v21  ;;  %v469_v31 = vmax.f32 %v431_v24, 0.0  ;;  %v1570_v21 = vld [vmem:[#allocation7 + $0x90] sm:$0xff]   ;;  %v1572_v23 = vld [vmem:[#allocation7 + $0x80] sm:$0xff]  }
 0x21b   :  { %v433_v27 = vpop.f32.mrf.mxu1  ;;  %1418 = vmatmul.mubr.bf16.gmra.mxu0 %v480_v22  ;;  %v1571_v22 = vld [vmem:[#allocation7 + $0x88] sm:$0xff]   ;;  %v1216_v24 = vld [vmem:[%s1759_s3 + $0x1] ss:$0 sm:$0xff] }
 0x21c   :  { %v434_v28 = vadd.f32 %v1198_v58, %v433_v27  ;;  %v472_v29 = vmax.f32 %v442_v25, 0.0  ;;  %1466 = vmatpush3.bf16.msra.mxu0 %v1567_v59 }
 0x21d   :  { %v1395_v30 = vpop.f32.mrf.mxu1  ;;  %1467 = vmatprep.subr.bf16.mxu0 %v1568_v60 }
 0x21e   :  { %v470_v32 = vmax.f32 %v434_v28, 0.0  ;;  %v482_v36 = vpack.c.bf16 %v472_v29, %v471_v33  ;;  %v455_v40 = vadd.f32 %v1395_v30, %v1198_v58 }
 0x21f   :  { %v446_v34 = vpop.f32.mrf.mxu1 }
 0x220   :  { %v481_v35 = vpack.c.bf16 %v470_v32, %v469_v31  ;;  %v447_v38 = vadd.f32 %v1198_v58, %v446_v34  ;;  %v475_v53 = vmax.f32 %v455_v40, 0.0  ;;  %1468 = vmatpush3.bf16.msra.mxu0 %v1568_v60 }
 0x221   :  { %v1396_v37 = vpop.f32.mrf.mxu1 }
 0x222   :  { %v458_v39 = vadd.f32 %v1396_v37, %v1198_v58  ;;  %1421 = vmatprep.mubr.bf16.mxu0 %v481_v35  ;;  %v473_v44 = vmax.f32 %v447_v38, 0.0 }
 0x223   :  { %v449_v41 = vpop.f32.mrf.mxu1  ;;  %1422 = vmatmul.mubr.bf16.gmra.mxu0 %v482_v36 }
 0x224   :  { %v450_v42 = vadd.f32 %v1198_v58, %v449_v41  ;;  %v476_v43 = vmax.f32 %v458_v39, 0.0  ;;  %v1569_v58 = vld [vmem:[#allocation7 + $0x98] sm:$0xff]  }
 0x225   :  { %1469 = vmatprep.subr.bf16.mxu0 %v1569_v58 }
 0x226   :  { %v474_v45 = vmax.f32 %v450_v42, 0.0  ;;  %v484_v55 = vpack.c.bf16 %v476_v43, %v475_v53  ;;  %1470 = vmatpush3.bf16.msra.mxu0 %v1569_v58 }
 0x227   :  { %1471 = vmatprep.subr.bf16.mxu0 %v1570_v21 }
 0x228   :  { %v483_v54 = vpack.c.bf16 %v474_v45, %v473_v44 }
 0x22a   :  { %1425 = vmatprep.mubr.bf16.mxu0 %v483_v54  ;;  %1472 = vmatpush3.bf16.msra.mxu0 %v1570_v21 }
 0x22b   :  { %1426 = vmatmul.mubr.bf16.gmra.mxu0 %v484_v55  ;;  %1473 = vmatprep.subr.bf16.mxu0 %v1571_v22 }
 0x22e   :  { %1474 = vmatpush3.bf16.msra.mxu0 %v1571_v22  ;;  %v1578_v22 = vld [vmem:[#allocation7 + $0xd0] sm:$0xff]  }
 0x22f   :  { %1475 = vmatprep.subr.bf16.mxu0 %v1572_v23 }
 0x232   :  { %1476 = vmatpush3.bf16.msra.mxu0 %v1572_v23  ;;  %v1579_v23 = vld [vmem:[#allocation7 + $0xc8] sm:$0xff]  }
 0x2d3   :  { %v1415_v61 = vpop.f32.mrf.mxu0 }
 0x2d5   :  { %v586_v62 = vpop.f32.mrf.mxu0 }
 0x2d7   :  { %v1416_v63 = vpop.f32.mrf.mxu0 }
 0x2d8   :  { %v650_v19 = vpack.c.bf16 %v1416_v63, %v1415_v61 }
 0x2d9   :  { %v589_v0 = vpop.f32.mrf.mxu0 }
 0x2da   :  { %v649_v20 = vpack.c.bf16 %v589_v0, %v586_v62 }
 0x2db   :  { %v1419_v1 = vpop.f32.mrf.mxu0 }
 0x2dd   :  { %v602_v2 = vpop.f32.mrf.mxu0 }
 0x2df   :  { %v1420_v3 = vpop.f32.mrf.mxu0 }
 0x2e0   :  { %v652_v17 = vpack.c.bf16 %v1420_v3, %v1419_v1 }
 0x2e1   :  { %v605_v4 = vpop.f32.mrf.mxu0 }
 0x2e2   :  { %v651_v18 = vpack.c.bf16 %v605_v4, %v602_v2 }
 0x2e3   :  { %v1423_v5 = vpop.f32.mrf.mxu0 }
 0x2e5   :  { %v618_v6 = vpop.f32.mrf.mxu0 }
 0x2e7   :  { %v1424_v7 = vpop.f32.mrf.mxu0 }
 0x2e8   :  { %v654_v15 = vpack.c.bf16 %v1424_v7, %v1423_v5 }
 0x2e9   :  { %v621_v8 = vpop.f32.mrf.mxu0 }
 0x2ea   :  { %v653_v16 = vpack.c.bf16 %v621_v8, %v618_v6 }
 0x2eb   :  { %v1427_v9 = vpop.f32.mrf.mxu0 }
 0x2ed   :  { %v634_v10 = vpop.f32.mrf.mxu0 }
 0x2ef   :  { %v1428_v11 = vpop.f32.mrf.mxu0 }
 0x2f0   :  { %v656_v12 = vpack.c.bf16 %v1428_v11, %v1427_v9 }
 0x2f1   :  { %v637_v13 = vpop.f32.mrf.mxu0 }
 0x2f2   :  { %v655_v14 = vpack.c.bf16 %v637_v13, %v634_v10  ;;  %1429 = vmatprep.subr.bf16.mxu1 %v656_v12 }
 0x2f3   :  { %1430 = vmatpush3.bf16.msra.mxu1 %v656_v12 }
 0x2f4   :  { %1431 = vmatprep.subr.bf16.mxu1 %v655_v14 }
 0x2f7   :  { %1432 = vmatpush3.bf16.msra.mxu1 %v655_v14 }
 0x2f8   :  { %1433 = vmatprep.subr.bf16.mxu1 %v654_v15 }
 0x2fb   :  { %1434 = vmatpush3.bf16.msra.mxu1 %v654_v15 }
 0x2fc   :  { %1435 = vmatprep.subr.bf16.mxu1 %v653_v16 }
 0x2ff   :  { %1436 = vmatpush3.bf16.msra.mxu1 %v653_v16 }
 0x300   :  { %1437 = vmatprep.subr.bf16.mxu1 %v652_v17 }
 0x303   :  { %1438 = vmatpush3.bf16.msra.mxu1 %v652_v17 }
 0x304   :  { %1439 = vmatprep.subr.bf16.mxu1 %v651_v18 }
 0x307   :  { %1440 = vmatpush3.bf16.msra.mxu1 %v651_v18 }
 0x308   :  { %1441 = vmatprep.subr.bf16.mxu1 %v650_v19 }
 0x30b   :  { %1442 = vmatpush3.bf16.msra.mxu1 %v650_v19 }
 0x30c   :  { %1443 = vmatprep.subr.bf16.mxu1 %v649_v20 }
 0x30f   :  { %1444 = vmatpush3.bf16.msra.mxu1 %v649_v20 }
 0x312   :  { %1446 = vmatmul.mubr.bf16.vlgmr.msra.gmra.mxu1 %v1712_v46  ;;  %v1573_v46 = vld [vmem:[#allocation7 + $0xf8] sm:$0xff]  }
 0x313   :  { %1449 = vmatprep.mubr.bf16.mxu1 %v1714_v47  ;;  %v1574_v47 = vld [vmem:[#allocation7 + $0xf0] sm:$0xff]   ;;  %1493 = vmatprep.subr.bf16.mxu1 %v1573_v46 }
 0x314   :  { %1494 = vmatpush3.bf16.msra.mxu1 %v1573_v46  ;;  %v1580_v46 = vld [vmem:[#allocation7 + $0xc0] sm:$0xff]  }
 0x315   :  { %1495 = vmatprep.subr.bf16.mxu1 %v1574_v47 }
 0x318   :  { %1496 = vmatpush3.bf16.msra.mxu1 %v1574_v47 }
 0x31a   :  { %1450 = vmatmul.mubr.bf16.gmra.mxu1 %v1718_v48  ;;  %v1575_v48 = vld [vmem:[#allocation7 + $0xe8] sm:$0xff]  }
 0x31b   :  { %1453 = vmatprep.mubr.bf16.mxu1 %v1720_v49  ;;  %1497 = vmatprep.subr.bf16.mxu1 %v1575_v48  ;;  %v1576_v49 = vld [vmem:[#allocation7 + $0xe0] sm:$0xff]  }
 0x31c   :  { %1498 = vmatpush3.bf16.msra.mxu1 %v1575_v48 }
 0x31d   :  { %1499 = vmatprep.subr.bf16.mxu1 %v1576_v49 }
 0x320   :  { %1500 = vmatpush3.bf16.msra.mxu1 %v1576_v49  ;;  %v1218_v49 = vld [vmem:[%s1759_s3 + $0x2] ss:$0 sm:$0xff] }
 0x322   :  { %1454 = vmatmul.mubr.bf16.gmra.mxu1 %v1724_v50  ;;  %v1577_v50 = vld [vmem:[#allocation7 + $0xd8] sm:$0xff]  }
 0x323   :  { %1457 = vmatprep.mubr.bf16.mxu1 %v1726_v51  ;;  %1501 = vmatprep.subr.bf16.mxu1 %v1577_v50 }
 0x324   :  { %1502 = vmatpush3.bf16.msra.mxu1 %v1577_v50 }
 0x325   :  { %1503 = vmatprep.subr.bf16.mxu1 %v1578_v22 }
 0x328   :  { %1504 = vmatpush3.bf16.msra.mxu1 %v1578_v22 }
 0x329   :  { %1505 = vmatprep.subr.bf16.mxu1 %v1579_v23 }
 0x32a   :  { %1458 = vmatmul.mubr.bf16.gmra.mxu1 %v1730_v52 }
 0x32c   :  { %1506 = vmatpush3.bf16.msra.mxu1 %v1579_v23 }
 0x32d   :  { %1507 = vmatprep.subr.bf16.mxu1 %v1580_v46 }
 0x330   :  { %1508 = vmatpush3.bf16.msra.mxu1 %v1580_v46 }
 0x3d2   :  { %v1447_v51 = vpop.f32.mrf.mxu1 }
 0x3d3   :  { %v706_v28 = vadd.f32 %v1447_v51, %v1216_v24 }
 0x3d4   :  { %v697_v52 = vpop.f32.mrf.mxu1 }
 0x3d5   :  { %v698_v26 = vadd.f32 %v1216_v24, %v697_v52  ;;  %v762_v35 = vmax.f32 %v706_v28, 0.0 }
 0x3d6   :  { %v1448_v25 = vpop.f32.mrf.mxu1 }
 0x3d7   :  { %v709_v27 = vadd.f32 %v1448_v25, %v1216_v24  ;;  %v760_v33 = vmax.f32 %v698_v26, 0.0 }
 0x3d8   :  { %v700_v29 = vpop.f32.mrf.mxu1 }
 0x3d9   :  { %v701_v30 = vadd.f32 %v1216_v24, %v700_v29  ;;  %v763_v31 = vmax.f32 %v709_v27, 0.0 }
 0x3da   :  { %v1451_v32 = vpop.f32.mrf.mxu1 }
 0x3db   :  { %v761_v34 = vmax.f32 %v701_v30, 0.0  ;;  %v777_v38 = vpack.c.bf16 %v763_v31, %v762_v35  ;;  %v722_v42 = vadd.f32 %v1451_v32, %v1216_v24 }
 0x3dc   :  { %v713_v36 = vpop.f32.mrf.mxu1 }
 0x3dd   :  { %v776_v37 = vpack.c.bf16 %v761_v34, %v760_v33  ;;  %v714_v40 = vadd.f32 %v1216_v24, %v713_v36  ;;  %v766_v56 = vmax.f32 %v722_v42, 0.0 }
 0x3de   :  { %v1452_v39 = vpop.f32.mrf.mxu1 }
 0x3df   :  { %v725_v41 = vadd.f32 %v1452_v39, %v1216_v24  ;;  %1477 = vmatprep.mubr.bf16.mxu0 %v776_v37  ;;  %v764_v54 = vmax.f32 %v714_v40, 0.0 }
 0x3e0   :  { %v716_v43 = vpop.f32.mrf.mxu1  ;;  %1478 = vmatmul.mubr.bf16.vlgmr.msra.gmra.mxu0 %v777_v38 }
 0x3e1   :  { %v717_v44 = vadd.f32 %v1216_v24, %v716_v43  ;;  %v767_v45 = vmax.f32 %v725_v41, 0.0 }
 0x3e2   :  { %v1455_v53 = vpop.f32.mrf.mxu1 }
 0x3e3   :  { %v765_v55 = vmax.f32 %v717_v44, 0.0  ;;  %v779_v60 = vpack.c.bf16 %v767_v45, %v766_v56  ;;  %v738_v63 = vadd.f32 %v1455_v53, %v1216_v24 }
 0x3e4   :  { %v729_v57 = vpop.f32.mrf.mxu1 }
 0x3e5   :  { %v778_v59 = vpack.c.bf16 %v765_v55, %v764_v54  ;;  %v730_v61 = vadd.f32 %v1216_v24, %v729_v57  ;;  %v770_v6 = vmax.f32 %v738_v63, 0.0 }
 0x3e6   :  { %v1456_v58 = vpop.f32.mrf.mxu1 }
 0x3e7   :  { %v741_v62 = vadd.f32 %v1456_v58, %v1216_v24  ;;  %1481 = vmatprep.mubr.bf16.mxu0 %v778_v59  ;;  %v768_v4 = vmax.f32 %v730_v61, 0.0 }
 0x3e8   :  { %v732_v0 = vpop.f32.mrf.mxu1  ;;  %1482 = vmatmul.mubr.bf16.gmra.mxu0 %v779_v60 }
 0x3e9   :  { %v733_v1 = vadd.f32 %v1216_v24, %v732_v0  ;;  %v771_v2 = vmax.f32 %v741_v62, 0.0 }
 0x3ea   :  { %v1459_v3 = vpop.f32.mrf.mxu1 }
 0x3eb   :  { %v769_v5 = vmax.f32 %v733_v1, 0.0  ;;  %v781_v9 = vpack.c.bf16 %v771_v2, %v770_v6  ;;  %v754_v13 = vadd.f32 %v1459_v3, %v1216_v24 }
 0x3ec   :  { %v745_v7 = vpop.f32.mrf.mxu1 }
 0x3ed   :  { %v780_v8 = vpack.c.bf16 %v769_v5, %v768_v4  ;;  %v746_v11 = vadd.f32 %v1216_v24, %v745_v7  ;;  %v774_v19 = vmax.f32 %v754_v13, 0.0 }
 0x3ee   :  { %v1460_v10 = vpop.f32.mrf.mxu1 }
 0x3ef   :  { %v757_v12 = vadd.f32 %v1460_v10, %v1216_v24  ;;  %1485 = vmatprep.mubr.bf16.mxu0 %v780_v8  ;;  %v772_v17 = vmax.f32 %v746_v11, 0.0 }
 0x3f0   :  { %v748_v14 = vpop.f32.mrf.mxu1  ;;  %1486 = vmatmul.mubr.bf16.gmra.mxu0 %v781_v9 }
 0x3f1   :  { %v749_v15 = vadd.f32 %v1216_v24, %v748_v14  ;;  %v775_v16 = vmax.f32 %v757_v12, 0.0 }
 0x3f3   :  { %v773_v18 = vmax.f32 %v749_v15, 0.0  ;;  %v783_v21 = vpack.c.bf16 %v775_v16, %v774_v19 }
 0x3f5   :  { %v782_v20 = vpack.c.bf16 %v773_v18, %v772_v17  ;;  %v1228_v18 = vld [vmem:[%s1759_s3 + $0x3] ss:$0 sm:$0xff]  ;;  %s1672_s3 = smov [#allocation8]  }
 0x3f6   :  { %s1169_s11 = sshll.u32 %s1672_s3, 4  ;;  %s1170_s11 = int_to_ptr.vmem [resolvable:$true] %s1169_s11 }
 0x3f7   :  { %1489 = vmatprep.mubr.bf16.mxu0 %v782_v20  ;;  %s1641_s12 = scalar_lea.vmem %s1170_s11, 2048  ;;  %p1646_p2 = scmp.lt.s32.totalorder %s1170_s11, %s1170_s11 }
 0x3f8   :  { %1490 = vmatmul.mubr.bf16.gmra.mxu0 %v783_v21  ;;  %p1642_p1 = scmp.ne.s32.totalorder %s1170_s11, %s1641_s12  ;;  %p1647_p3 = scmp.lt.s32.totalorder %s1641_s12, %s1641_s12 }
 0x3fa   :  { %p1648_p4 = por %p1647_p3, %p1646_p2 }
 0x3fc   :  { %p1649_p5 = pnand %p1648_p4, %p1642_p1 }
 0x4a0   :  { %v1479_v47 = vpop.f32.mrf.mxu0 }
 0x4a1   :  { %v900_v24 = vadd.f32 %v1479_v47, %v1218_v49 }
 0x4a2   :  { %v891_v48 = vpop.f32.mrf.mxu0 }
 0x4a3   :  { %v892_v51 = vadd.f32 %v1218_v49, %v891_v48  ;;  %v956_v31 = vmax.f32 %v900_v24, 0.0 }
 0x4a4   :  { %v1480_v50 = vpop.f32.mrf.mxu0 }
 0x4a5   :  { %v903_v52 = vadd.f32 %v1480_v50, %v1218_v49  ;;  %v954_v29 = vmax.f32 %v892_v51, 0.0 }
 0x4a6   :  { %v894_v25 = vpop.f32.mrf.mxu0 }
 0x4a7   :  { %v895_v26 = vadd.f32 %v1218_v49, %v894_v25  ;;  %v957_v27 = vmax.f32 %v903_v52, 0.0 }
 0x4a8   :  { %v1483_v28 = vpop.f32.mrf.mxu0 }
 0x4a9   :  { %v955_v30 = vmax.f32 %v895_v26, 0.0  ;;  %v971_v34 = vpack.c.bf16 %v957_v27, %v956_v31  ;;  %v916_v38 = vadd.f32 %v1483_v28, %v1218_v49 }
 0x4aa   :  { %v907_v32 = vpop.f32.mrf.mxu0 }
 0x4ab   :  { %v970_v33 = vpack.c.bf16 %v955_v30, %v954_v29  ;;  %v908_v36 = vadd.f32 %v1218_v49, %v907_v32  ;;  %v960_v45 = vmax.f32 %v916_v38, 0.0 }
 0x4ac   :  { %v1484_v35 = vpop.f32.mrf.mxu0 }
 0x4ad   :  { %v919_v37 = vadd.f32 %v1484_v35, %v1218_v49  ;;  %1509 = vmatprep.mubr.bf16.mxu1 %v970_v33  ;;  %v958_v43 = vmax.f32 %v908_v36, 0.0 }
 0x4ae   :  { %v910_v39 = vpop.f32.mrf.mxu0  ;;  %1510 = vmatmul.mubr.bf16.vlgmr.msra.gmra.mxu1 %v971_v34 }
 0x4af   :  { %v911_v40 = vadd.f32 %v1218_v49, %v910_v39  ;;  %v961_v41 = vmax.f32 %v919_v37, 0.0 }
 0x4b0   :  { %v1487_v42 = vpop.f32.mrf.mxu0 }
 0x4b1   :  { %v959_v44 = vmax.f32 %v911_v40, 0.0  ;;  %v973_v55 = vpack.c.bf16 %v961_v41, %v960_v45  ;;  %v932_v60 = vadd.f32 %v1487_v42, %v1218_v49 }
 0x4b2   :  { %v923_v53 = vpop.f32.mrf.mxu0 }
 0x4b3   :  { %v972_v54 = vpack.c.bf16 %v959_v44, %v958_v43  ;;  %v924_v57 = vadd.f32 %v1218_v49, %v923_v53  ;;  %v964_v2 = vmax.f32 %v932_v60, 0.0 }
 0x4b4   :  { %v1488_v56 = vpop.f32.mrf.mxu0 }
 0x4b5   :  { %v935_v59 = vadd.f32 %v1488_v56, %v1218_v49  ;;  %1513 = vmatprep.mubr.bf16.mxu1 %v972_v54  ;;  %v962_v0 = vmax.f32 %v924_v57, 0.0 }
 0x4b6   :  { %v926_v58 = vpop.f32.mrf.mxu0  ;;  %1514 = vmatmul.mubr.bf16.gmra.mxu1 %v973_v55 }
 0x4b7   :  { %v927_v61 = vadd.f32 %v1218_v49, %v926_v58  ;;  %v965_v62 = vmax.f32 %v935_v59, 0.0 }
 0x4b8   :  { %v1491_v63 = vpop.f32.mrf.mxu0 }
 0x4b9   :  { %v963_v1 = vmax.f32 %v927_v61, 0.0  ;;  %v975_v5 = vpack.c.bf16 %v965_v62, %v964_v2  ;;  %v948_v9 = vadd.f32 %v1491_v63, %v1218_v49 }
 0x4ba   :  { %v939_v3 = vpop.f32.mrf.mxu0 }
 0x4bb   :  { %v974_v4 = vpack.c.bf16 %v963_v1, %v962_v0  ;;  %v940_v7 = vadd.f32 %v1218_v49, %v939_v3  ;;  %v968_v15 = vmax.f32 %v948_v9, 0.0 }
 0x4bc   :  { %v1492_v6 = vpop.f32.mrf.mxu0 }
 0x4bd   :  { %v951_v8 = vadd.f32 %v1492_v6, %v1218_v49  ;;  %1517 = vmatprep.mubr.bf16.mxu1 %v974_v4  ;;  %v966_v13 = vmax.f32 %v940_v7, 0.0 }
 0x4be   :  { %v942_v10 = vpop.f32.mrf.mxu0  ;;  %1518 = vmatmul.mubr.bf16.gmra.mxu1 %v975_v5 }
 0x4bf   :  { %v943_v11 = vadd.f32 %v1218_v49, %v942_v10  ;;  %v969_v12 = vmax.f32 %v951_v8, 0.0 }
 0x4c1   :  { %v967_v14 = vmax.f32 %v943_v11, 0.0  ;;  %v977_v17 = vpack.c.bf16 %v969_v12, %v968_v15 }
 0x4c3   :  { %v976_v16 = vpack.c.bf16 %v967_v14, %v966_v13 }
 0x4c5   :  { %1521 = vmatprep.mubr.bf16.mxu1 %v976_v16 }
 0x4c6   :  { %1522 = vmatmul.mubr.bf16.gmra.mxu1 %v977_v17 }
 0x56e   :  { %v1511_v19 = vpop.f32.mrf.mxu1 }
 0x56f   :  { %v1094_v20 = vadd.f32 %v1511_v19, %v1228_v18 }
 0x570   :  { %v1085_v21 = vpop.f32.mrf.mxu1 }
 0x571   :  { %1150 = vst [vmem:[#allocation8 + $0x10] sm:$0xff] %v1094_v20  ;;  %v1086_v22 = vadd.f32 %v1228_v18, %v1085_v21 }
 0x572   :  { %v1512_v23 = vpop.f32.mrf.mxu1 }
 0x573   :  { %1148 = vst [vmem:[#allocation8] sm:$0xff] %v1086_v22  ;;  %v1097_v46 = vadd.f32 %v1512_v23, %v1228_v18 }
 0x574   :  { %v1088_v47 = vpop.f32.mrf.mxu1 }
 0x575   :  { %1151 = vst [vmem:[#allocation8 + $0x18] sm:$0xff] %v1097_v46  ;;  %v1089_v48 = vadd.f32 %v1228_v18, %v1088_v47 }
 0x576   :  { %v1515_v49 = vpop.f32.mrf.mxu1 }
 0x577   :  { %1149 = vst [vmem:[#allocation8 + $0x8] sm:$0xff] %v1089_v48  ;;  %v1110_v50 = vadd.f32 %v1515_v49, %v1228_v18 }
 0x578   :  { %v1101_v51 = vpop.f32.mrf.mxu1 }
 0x579   :  { %1154 = vst [vmem:[#allocation8 + $0x30] sm:$0xff] %v1110_v50  ;;  %v1102_v52 = vadd.f32 %v1228_v18, %v1101_v51 }
 0x57a   :  { %v1516_v24 = vpop.f32.mrf.mxu1 }
 0x57b   :  { %1152 = vst [vmem:[#allocation8 + $0x20] sm:$0xff] %v1102_v52  ;;  %v1113_v25 = vadd.f32 %v1516_v24, %v1228_v18 }
 0x57c   :  { %v1104_v26 = vpop.f32.mrf.mxu1 }
 0x57d   :  { %1155 = vst [vmem:[#allocation8 + $0x38] sm:$0xff] %v1113_v25  ;;  %v1105_v27 = vadd.f32 %v1228_v18, %v1104_v26 }
 0x57e   :  { %v1519_v28 = vpop.f32.mrf.mxu1 }
 0x57f   :  { %1153 = vst [vmem:[#allocation8 + $0x28] sm:$0xff] %v1105_v27  ;;  %v1126_v29 = vadd.f32 %v1519_v28, %v1228_v18 }
 0x580   :  { %v1117_v30 = vpop.f32.mrf.mxu1 }
 0x581   :  { %1158 = vst [vmem:[#allocation8 + $0x50] sm:$0xff] %v1126_v29  ;;  %v1118_v31 = vadd.f32 %v1228_v18, %v1117_v30 }
 0x582   :  { %v1520_v32 = vpop.f32.mrf.mxu1 }
 0x583   :  { %1156 = vst [vmem:[#allocation8 + $0x40] sm:$0xff] %v1118_v31  ;;  %v1129_v33 = vadd.f32 %v1520_v32, %v1228_v18 }
 0x584   :  { %v1120_v34 = vpop.f32.mrf.mxu1 }
 0x585   :  { %1159 = vst [vmem:[#allocation8 + $0x58] sm:$0xff] %v1129_v33  ;;  %v1121_v35 = vadd.f32 %v1228_v18, %v1120_v34 }
 0x586   :  { %v1523_v36 = vpop.f32.mrf.mxu1 }
 0x587   :  { %1157 = vst [vmem:[#allocation8 + $0x48] sm:$0xff] %v1121_v35  ;;  %v1142_v37 = vadd.f32 %v1523_v36, %v1228_v18 }
 0x588   :  { %v1133_v38 = vpop.f32.mrf.mxu1 }
 0x589   :  { %1162 = vst [vmem:[#allocation8 + $0x70] sm:$0xff] %v1142_v37  ;;  %v1134_v39 = vadd.f32 %v1228_v18, %v1133_v38 }
 0x58a   :  { %v1524_v40 = vpop.f32.mrf.mxu1 }
 0x58b   :  { %1160 = vst [vmem:[#allocation8 + $0x60] sm:$0xff] %v1134_v39  ;;  %v1145_v41 = vadd.f32 %v1524_v40, %v1228_v18 }
 0x58c   :  { %v1136_v42 = vpop.f32.mrf.mxu1 }
 0x58d   :  { %1163 = vst [vmem:[#allocation8 + $0x78] sm:$0xff] %v1145_v41  ;;  %v1137_v43 = vadd.f32 %v1228_v18, %v1136_v42 }
 0x58f   :  { %1161 = vst [vmem:[#allocation8 + $0x68] sm:$0xff] %v1137_v43 }
 0x590   :  { %1652 = shalt.err (!%p1649_p5)
}
 0x591   :  { %s1673_s13 = smov 128   ;;  %s1674_s14 = smov 8  }
 0x592   :  { %1175 = dma.vmem_to_hbm [thread:$0]  %s1170_s11, 2048, %s1760_s4, [#allocation4], %s1673_s13, %s1673_s13, %s1674_s14  }
 0x593   :  { %1665 = dma.done.wait [#allocation4], 2048  }
 0x594   :  { %1666 = vsyncadd [#allocation4], 4294965248 }
 0x595   :  { %1179 = vsyncpa [#allocation3], 1 }
 0x596   :  { %1180 = vsyncpa [#allocation6], 1 }
 0x597   :  { %1181 = vsyncpa [#allocation4], 1 }

</bundles_post_ra>
